<compile_context>
chip_gen: v7x
topology: tpu7x:2x2x1
jax: 0.10.0
libtpu: 0.0.40
codegen_flags: <defaults>
</compile_context>

<pallas_src>
import jax
import jax.numpy as jnp
from jax.experimental import pallas as pl
from jax.experimental.pallas import tpu as pltpu


# ----------------------------------------------------------------------------
# Fused multi-layer Fastformer kernel.
#   grid = (num_batch_blocks, num_layers); layer axis is "arbitrary" (carried).
#   x_ref    : (BB, N, D)  input activations (read only at layer 0)
#   m_ref    : (BB, N, 1)  mask as f32 (1.0 = padded row to ignore)
#   wqkv_ref : (1, D, 3D)  fused [Wq^T | Wk^T | Wv^T] for the current layer
#   wr_ref   : (1, D, D)   Wr^T for the current layer
#   ab_ref   : (1, 2, D)   [alpha*scale ; beta*scale] for the current layer
#   o_ref    : (BB, D)     special-token output (written only at last layer)
#   act_ref  : (BB, N, D)  VMEM scratch carrying the activation across layers
# ----------------------------------------------------------------------------
def _fused_fastformer_kernel(x_ref, m_ref, wqkv_ref, wr_ref, ab_ref,
                             o_ref, act_ref):
    layer = pl.program_id(1)
    n_layers = pl.num_programs(1)

    @pl.when(layer == 0)
    def _():
        act_ref[...] = x_ref[...]

    x = act_ref[...]                                   # (BB, N, D) f32
    BB, N, D = x.shape
    mask = m_ref[...] > 0.5                            # (BB, N, 1) bool
    neg = jnp.float32(-jnp.finfo(jnp.float32).max)

    alpha = ab_ref[...][:, 0:1, :]                     # (1, 1, D), pre-scaled
    beta = ab_ref[...][:, 1:2, :]                      # (1, 1, D), pre-scaled

    # Fused Q/K/V projection: one wide matmul on the MXU.
    qkv = jnp.dot(x.reshape(BB * N, D), wqkv_ref[0],
                  preferred_element_type=jnp.float32)  # (BB*N, 3D)
    qkv = qkv.reshape(BB, N, 3 * D)
    q = qkv[:, :, 0 * D:1 * D]
    k = qkv[:, :, 1 * D:2 * D]
    v = qkv[:, :, 2 * D:3 * D]

    # alpha attention: softmax over the feature dim (per row), masked rows
    # become uniform (matches the reference masking semantics).
    aw = jnp.where(mask, neg, q * alpha)
    aw = jnp.exp(aw - jnp.max(aw, axis=-1, keepdims=True))
    aw = aw / jnp.sum(aw, axis=-1, keepdims=True)
    global_query = jnp.sum(q * aw, axis=1, keepdims=True)      # (BB, 1, D)

    # beta attention.
    p = global_query * k                                        # (BB, N, D)
    bw = jnp.where(mask, neg, p * beta)
    bw = jnp.exp(bw - jnp.max(bw, axis=-1, keepdims=True))
    bw = bw / jnp.sum(bw, axis=-1, keepdims=True)
    global_key = jnp.sum(p * bw, axis=1, keepdims=True)         # (BB, 1, D)

    # key/value interaction + output projection + residual (query).
    kvi = global_key * v                                         # (BB, N, D)
    out = jnp.dot(kvi.reshape(BB * N, D), wr_ref[0],
                  preferred_element_type=jnp.float32).reshape(BB, N, D) + q

    @pl.when(layer < n_layers - 1)
    def _():
        act_ref[...] = out

    @pl.when(layer == n_layers - 1)
    def _():
        # Only the special-token row is needed by the aggregator.
        o_ref[...] = out[:, 0, :].astype(o_ref.dtype)


# ----------------------------------------------------------------------------
# Module wrapper: RowsFastformerAggregator.forward
# ----------------------------------------------------------------------------
def rows_fastformer_aggregator(x, rows_per_month_mask, params, seq_block=None):
    """x: (bs, ms, n_rows, hidden). rows_per_month_mask: (bs, ms, n_rows) bool
    (True = padded row to ignore). Returns (bs, ms, hidden)."""
    bs, ms, n_rows, hs = x.shape
    B, N, D = bs * ms, n_rows + 1, hs
    n_layers = len(params["layers"])

    # Prepend the special token, flatten to (B, N, D).
    special = jnp.broadcast_to(params["special_token"].astype(jnp.float32),
                               (bs, ms, 1, hs))
    xx = jnp.concatenate([special, x.astype(jnp.float32)], axis=2)
    xx = xx.reshape(B, N, D)

    mask = jnp.pad(rows_per_month_mask, ((0, 0), (0, 0), (1, 0)),
                   constant_values=False)                       # special token unmasked
    mask_f = mask.reshape(B, N).astype(jnp.float32)[..., None]  # (B, N, 1)

    # Stack per-layer weights; fuse Q/K/V; pre-scale alpha/beta.
    scale = jnp.float32(D ** (-0.5))
    wqkv = jnp.stack([jnp.concatenate([lp["wq_t"], lp["wk_t"], lp["wv_t"]],
                                      axis=1) for lp in params["layers"]])  # (L, D, 3D)
    wr = jnp.stack([lp["wr_t"] for lp in params["layers"]])                 # (L, D, D)
    ab = jnp.stack([jnp.concatenate([lp["alpha"] * scale, lp["beta"] * scale],
                                    axis=0) for lp in params["layers"]])    # (L, 2, D)

    # Sequences per block: ~2 MiB f32 activation tile (safe under the 16 MiB
    # v5e scoped-VMEM default even with double-buffered inputs + scratch).
    if seq_block is None:
        seq_block = max(1, (2 << 20) // (N * D * 4))
    BB = min(seq_block, B)
    n_blocks = pl.cdiv(B, BB)
    B_pad = n_blocks * BB
    if B_pad != B:
        xx = jnp.pad(xx, ((0, B_pad - B), (0, 0), (0, 0)))
        mask_f = jnp.pad(mask_f, ((0, B_pad - B), (0, 0), (0, 0)))

    out = pl.pallas_call(
        _fused_fastformer_kernel,
        out_shape=jax.ShapeDtypeStruct((B_pad, D), jnp.float32),
        grid_spec=pltpu.PrefetchScalarGridSpec(
            num_scalar_prefetch=0,
            grid=(n_blocks, n_layers),
            in_specs=[
                pl.BlockSpec((BB, N, D), lambda b, l: (b, 0, 0)),      # x
                pl.BlockSpec((BB, N, 1), lambda b, l: (b, 0, 0)),      # mask
                pl.BlockSpec((1, D, 3 * D), lambda b, l: (l, 0, 0)),   # Wqkv^T
                pl.BlockSpec((1, D, D), lambda b, l: (l, 0, 0)),       # Wr^T
                pl.BlockSpec((1, 2, D), lambda b, l: (l, 0, 0)),       # alpha/beta (pre-scaled)
            ],
            out_specs=pl.BlockSpec((BB, D), lambda b, l: (b, 0)),
            scratch_shapes=[pltpu.VMEM((BB, N, D), jnp.float32)],
        ),
        compiler_params=pltpu.CompilerParams(
            dimension_semantics=("parallel", "arbitrary")),
    )(xx, mask_f, wqkv, wr, ab)

    # TODO(synk): if the production hidden_size is < 128, consider folding
    # sequences into the lane dim (or padding D) for lane-dense stores.
    return out[:B].reshape(bs, ms, D)


# ----------------------------------------------------------------------------
# Pure-JAX reference (mirrors the PyTorch forward) for a sanity check.
# ----------------------------------------------------------------------------
def _reference(x, rows_per_month_mask, params):
    bs, ms, n_rows, hs = x.shape
    special = jnp.broadcast_to(params["special_token"], (bs, ms, 1, hs))
    xx = jnp.concatenate([special, x.astype(jnp.float32)], axis=2)
    xx = xx.reshape(bs * ms, n_rows + 1, hs)
    mask = jnp.pad(rows_per_month_mask, ((0, 0), (0, 0), (1, 0)),
                   constant_values=False).reshape(bs * ms, n_rows + 1)[..., None]
    neg = -jnp.finfo(jnp.float32).max
    scale = hs ** (-0.5)
    for layer in params["layers"]:
        q = xx @ layer["wq_t"]
        k = xx @ layer["wk_t"]
        v = xx @ layer["wv_t"]
        aw = jnp.where(mask, neg, q * layer["alpha"][0] * scale)
        aw = jax.nn.softmax(aw, axis=-1)
        gq = jnp.sum(q * aw, axis=1, keepdims=True)
        p = gq * k
        bw = jnp.where(mask, neg, p * layer["beta"][0] * scale)
        bw = jax.nn.softmax(bw, axis=-1)
        gk = jnp.sum(p * bw, axis=1, keepdims=True)
        xx = (gk * v) @ layer["wr_t"] + q
    return xx[:, 0].reshape(bs, ms, hs)


# ----------------------------------------------------------------------------
def make_params(key, hidden_size, num_layers):
    keys = jax.random.split(key, 1 + num_layers)
    params = {"special_token": jax.random.normal(keys[0], (hidden_size,), jnp.float32),
              "layers": []}
    for li in range(num_layers):
        lk = jax.random.split(keys[1 + li], 6)
        # nn.Linear weights are (out, in); store transposed (in, out).
        params["layers"].append({
            "wq_t": jax.random.normal(lk[0], (hidden_size, hidden_size), jnp.float32) * 0.1,
            "wk_t": jax.random.normal(lk[1], (hidden_size, hidden_size), jnp.float32) * 0.1,
            "wv_t": jax.random.normal(lk[2], (hidden_size, hidden_size), jnp.float32) * 0.1,
            "wr_t": jax.random.normal(lk[3], (hidden_size, hidden_size), jnp.float32) * 0.1,
            "alpha": jax.random.normal(lk[4], (1, hidden_size), jnp.float32),
            "beta": jax.random.normal(lk[5], (1, hidden_size), jnp.float32),
        })
    return params


if __name__ == "__main__":
    bs, ms, n_rows, hidden_size, num_layers = 2, 3, 7, 32, 2

    key = jax.random.PRNGKey(0)
    k_x, k_m, k_p = jax.random.split(key, 3)

    x = jax.random.normal(k_x, (bs, ms, n_rows, hidden_size), jnp.float32)
    rows_mask = jax.random.bernoulli(k_m, 0.3, (bs, ms, n_rows))   # True = padded
    params = make_params(k_p, hidden_size, num_layers)

    out = rows_fastformer_aggregator(x, rows_mask, params)
    out = jax.block_until_ready(out)

    ref = _reference(x, rows_mask, params)
    assert out.shape == (bs, ms, hidden_size)
    assert jnp.allclose(out, ref, rtol=1e-3, atol=1e-3), "mismatch vs reference"

    print("KERNEL_OK")
</pallas_src>

<mosaic_0001>
module attributes {stable_mosaic.version = 11 : i64} {
  func.func @_fused_fastformer_kernel(%arg0: i32, %arg1: i32, %arg2: memref<6x8x32xf32, #tpu.memory_space<vmem>>, %arg3: memref<6x8x1xf32, #tpu.memory_space<vmem>>, %arg4: memref<1x32x96xf32, #tpu.memory_space<vmem>>, %arg5: memref<1x32x32xf32, #tpu.memory_space<vmem>>, %arg6: memref<1x2x32xf32, #tpu.memory_space<vmem>>, %arg7: memref<6x32xf32, #tpu.memory_space<vmem>>, %arg8: memref<6x8x32xf32, #tpu.memory_space<vmem>>) attributes {dimension_semantics = [#tpu.dimension_semantics<parallel>, #tpu.dimension_semantics<arbitrary>], iteration_bounds = array<i64: 1, 2>, scalar_prefetch = 0 : i64, scratch_operands = 1 : i64, tpu.core_type = #tpu.core_type<tc>, window_params = [{transform_indices = @transform_0, window_bounds = array<i64: 6, 8, 32>}, {transform_indices = @transform_1, window_bounds = array<i64: 6, 8, 1>}, {transform_indices = @transform_2, window_bounds = array<i64: 1, 32, 96>}, {transform_indices = @transform_3, window_bounds = array<i64: 1, 32, 32>}, {transform_indices = @transform_4, window_bounds = array<i64: 1, 2, 32>}, {transform_indices = @transform_5, window_bounds = array<i64: 6, 32>}]} {
    %c0_i32 = arith.constant 0 : i32
    %0 = arith.cmpi eq, %arg1, %c0_i32 : i32
    %1 = arith.extui %0 : i1 to i32
    %c0_i32_0 = arith.constant 0 : i32
    %2 = arith.cmpi ne, %1, %c0_i32_0 : i32
    scf.if %2 {
      %c0_31 = arith.constant 0 : index
      %c0_32 = arith.constant 0 : index
      %c0_33 = arith.constant 0 : index
      %71 = vector.load %arg2[%c0_31, %c0_32, %c0_33] : memref<6x8x32xf32, #tpu.memory_space<vmem>>, vector<6x8x32xf32>
      %c0_34 = arith.constant 0 : index
      %c0_35 = arith.constant 0 : index
      %c0_36 = arith.constant 0 : index
      %72 = vector.load %arg8[%c0_34, %c0_35, %c0_36] : memref<6x8x32xf32, #tpu.memory_space<vmem>>, vector<6x8x32xf32>
      tpu.vector_store %arg8[%c0_34, %c0_35, %c0_36], %71 {strides = array<i32>} : memref<6x8x32xf32, #tpu.memory_space<vmem>>, vector<6x8x32xf32>,
    } else {
    }
    %c0 = arith.constant 0 : index
    %c0_1 = arith.constant 0 : index
    %c0_2 = arith.constant 0 : index
    %3 = vector.load %arg8[%c0, %c0_1, %c0_2] : memref<6x8x32xf32, #tpu.memory_space<vmem>>, vector<6x8x32xf32>
    %c0_3 = arith.constant 0 : index
    %c0_4 = arith.constant 0 : index
    %c0_5 = arith.constant 0 : index
    %4 = vector.load %arg3[%c0_3, %c0_4, %c0_5] : memref<6x8x1xf32, #tpu.memory_space<vmem>>, vector<6x8x1xf32>
    %cst = arith.constant 5.000000e-01 : f32
    %5 = vector.broadcast %cst : f32 to vector<6x8x1xf32>
    %6 = arith.cmpf ogt, %4, %5 : vector<6x8x1xf32>
    %c0_6 = arith.constant 0 : index
    %c0_7 = arith.constant 0 : index
    %c0_8 = arith.constant 0 : index
    %7 = vector.load %arg6[%c0_6, %c0_7, %c0_8] : memref<1x2x32xf32, #tpu.memory_space<vmem>>, vector<1x2x32xf32>
    %8 = vector.extract_strided_slice %7 {offsets = [0, 0, 0], sizes = [1, 1, 32], strides = [1, 1, 1]} : vector<1x2x32xf32> to vector<1x1x32xf32>
    %c0_9 = arith.constant 0 : index
    %c0_10 = arith.constant 0 : index
    %c0_11 = arith.constant 0 : index
    %9 = vector.load %arg6[%c0_9, %c0_10, %c0_11] : memref<1x2x32xf32, #tpu.memory_space<vmem>>, vector<1x2x32xf32>
    %10 = vector.extract_strided_slice %9 {offsets = [0, 1, 0], sizes = [1, 1, 32], strides = [1, 1, 1]} : vector<1x2x32xf32> to vector<1x1x32xf32>
    %11 = vector.shape_cast %3 : vector<6x8x32xf32> to vector<48x32xf32>
    %c0_12 = arith.constant 0 : index
    %c0_13 = arith.constant 0 : index
    %c0_14 = arith.constant 0 : index
    %12 = vector.load %arg4[%c0_12, %c0_13, %c0_14] : memref<1x32x96xf32, #tpu.memory_space<vmem>>, vector<1x32x96xf32>
    %13 = vector.shape_cast %12 : vector<1x32x96xf32> to vector<32x96xf32>
    %cst_15 = arith.constant dense<0.000000e+00> : vector<48x96xf32>
    %14 = tpu.matmul %11, %13, %cst_15 {dimension_numbers = #tpu.dot_dimension_numbers<[1], [0], [0], [1], [0, 0, 1, 1], [], []>} : vector<48x32xf32>, vector<32x96xf32>, vector<48x96xf32> -> vector<48x96xf32>
    %15 = vector.shape_cast %14 : vector<48x96xf32> to vector<6x8x96xf32>
    %16 = vector.extract_strided_slice %15 {offsets = [0, 0, 0], sizes = [6, 8, 32], strides = [1, 1, 1]} : vector<6x8x96xf32> to vector<6x8x32xf32>
    %17 = vector.extract_strided_slice %15 {offsets = [0, 0, 32], sizes = [6, 8, 32], strides = [1, 1, 1]} : vector<6x8x96xf32> to vector<6x8x32xf32>
    %18 = vector.extract_strided_slice %15 {offsets = [0, 0, 64], sizes = [6, 8, 32], strides = [1, 1, 1]} : vector<6x8x96xf32> to vector<6x8x32xf32>
    %19 = vector.broadcast %8 : vector<1x1x32xf32> to vector<6x8x32xf32>
    %20 = arith.mulf %16, %19 : vector<6x8x32xf32>
    %cst_16 = arith.constant -3.40282347E+38 : f32
    %21 = vector.shape_cast %6 : vector<6x8x1xi1> to vector<6x8x1xi1>
    %22 = vector.broadcast %21 : vector<6x8x1xi1> to vector<6x8x32xi1>
    %23 = vector.broadcast %cst_16 : f32 to vector<6x8x32xf32>
    %24 = arith.select %22, %23, %20 : vector<6x8x32xi1>, vector<6x8x32xf32>
    %cst_17 = arith.constant dense<0xFF800000> : vector<6x8xf32>
    %25 = vector.multi_reduction <maximumf>, %24, %cst_17 [2] : vector<6x8x32xf32> to vector<6x8xf32>
    %26 = vector.shape_cast %25 : vector<6x8xf32> to vector<6x8x1xf32>
    %27 = vector.broadcast %26 : vector<6x8x1xf32> to vector<6x8x32xf32>
    %28 = arith.subf %24, %27 : vector<6x8x32xf32>
    %29 = math.exp %28 : vector<6x8x32xf32>
    %cst_18 = arith.constant dense<0.000000e+00> : vector<6x8xf32>
    %30 = vector.multi_reduction <add>, %29, %cst_18 [2] : vector<6x8x32xf32> to vector<6x8xf32>
    %31 = vector.shape_cast %30 : vector<6x8xf32> to vector<6x8x1xf32>
    %32 = vector.broadcast %31 : vector<6x8x1xf32> to vector<6x8x32xf32>
    %33 = arith.divf %29, %32 : vector<6x8x32xf32>
    %34 = arith.mulf %16, %33 : vector<6x8x32xf32>
    %cst_19 = arith.constant dense<0.000000e+00> : vector<6x32xf32>
    %35 = vector.multi_reduction <add>, %34, %cst_19 [1] : vector<6x8x32xf32> to vector<6x32xf32>
    %36 = vector.shape_cast %35 : vector<6x32xf32> to vector<6x1x32xf32>
    %37 = vector.broadcast %36 : vector<6x1x32xf32> to vector<6x8x32xf32>
    %38 = arith.mulf %37, %17 : vector<6x8x32xf32>
    %39 = vector.broadcast %10 : vector<1x1x32xf32> to vector<6x8x32xf32>
    %40 = arith.mulf %38, %39 : vector<6x8x32xf32>
    %cst_20 = arith.constant -3.40282347E+38 : f32
    %41 = vector.shape_cast %6 : vector<6x8x1xi1> to vector<6x8x1xi1>
    %42 = vector.broadcast %41 : vector<6x8x1xi1> to vector<6x8x32xi1>
    %43 = vector.broadcast %cst_20 : f32 to vector<6x8x32xf32>
    %44 = arith.select %42, %43, %40 : vector<6x8x32xi1>, vector<6x8x32xf32>
    %cst_21 = arith.constant dense<0xFF800000> : vector<6x8xf32>
    %45 = vector.multi_reduction <maximumf>, %44, %cst_21 [2] : vector<6x8x32xf32> to vector<6x8xf32>
    %46 = vector.shape_cast %45 : vector<6x8xf32> to vector<6x8x1xf32>
    %47 = vector.broadcast %46 : vector<6x8x1xf32> to vector<6x8x32xf32>
    %48 = arith.subf %44, %47 : vector<6x8x32xf32>
    %49 = math.exp %48 : vector<6x8x32xf32>
    %cst_22 = arith.constant dense<0.000000e+00> : vector<6x8xf32>
    %50 = vector.multi_reduction <add>, %49, %cst_22 [2] : vector<6x8x32xf32> to vector<6x8xf32>
    %51 = vector.shape_cast %50 : vector<6x8xf32> to vector<6x8x1xf32>
    %52 = vector.broadcast %51 : vector<6x8x1xf32> to vector<6x8x32xf32>
    %53 = arith.divf %49, %52 : vector<6x8x32xf32>
    %54 = arith.mulf %38, %53 : vector<6x8x32xf32>
    %cst_23 = arith.constant dense<0.000000e+00> : vector<6x32xf32>
    %55 = vector.multi_reduction <add>, %54, %cst_23 [1] : vector<6x8x32xf32> to vector<6x32xf32>
    %56 = vector.shape_cast %55 : vector<6x32xf32> to vector<6x1x32xf32>
    %57 = vector.broadcast %56 : vector<6x1x32xf32> to vector<6x8x32xf32>
    %58 = arith.mulf %57, %18 : vector<6x8x32xf32>
    %59 = vector.shape_cast %58 : vector<6x8x32xf32> to vector<48x32xf32>
    %c0_24 = arith.constant 0 : index
    %c0_25 = arith.constant 0 : index
    %c0_26 = arith.constant 0 : index
    %60 = vector.load %arg5[%c0_24, %c0_25, %c0_26] : memref<1x32x32xf32, #tpu.memory_space<vmem>>, vector<1x32x32xf32>
    %61 = vector.shape_cast %60 : vector<1x32x32xf32> to vector<32x32xf32>
    %cst_27 = arith.constant dense<0.000000e+00> : vector<48x32xf32>
    %62 = tpu.matmul %59, %61, %cst_27 {dimension_numbers = #tpu.dot_dimension_numbers<[1], [0], [0], [1], [0, 0, 1, 1], [], []>} : vector<48x32xf32>, vector<32x32xf32>, vector<48x32xf32> -> vector<48x32xf32>
    %63 = vector.shape_cast %62 : vector<48x32xf32> to vector<6x8x32xf32>
    %64 = arith.addf %63, %16 : vector<6x8x32xf32>
    %c1_i32 = arith.constant 1 : i32
    %65 = arith.cmpi slt, %arg1, %c1_i32 : i32
    %66 = arith.extui %65 : i1 to i32
    %c0_i32_28 = arith.constant 0 : i32
    %67 = arith.cmpi ne, %66, %c0_i32_28 : i32
    scf.if %67 {
      %c0_31 = arith.constant 0 : index
      %c0_32 = arith.constant 0 : index
      %c0_33 = arith.constant 0 : index
      %71 = vector.load %arg8[%c0_31, %c0_32, %c0_33] : memref<6x8x32xf32, #tpu.memory_space<vmem>>, vector<6x8x32xf32>
      tpu.vector_store %arg8[%c0_31, %c0_32, %c0_33], %64 {strides = array<i32>} : memref<6x8x32xf32, #tpu.memory_space<vmem>>, vector<6x8x32xf32>,
    } else {
    }
    %c1_i32_29 = arith.constant 1 : i32
    %68 = arith.cmpi eq, %arg1, %c1_i32_29 : i32
    %69 = arith.extui %68 : i1 to i32
    %c0_i32_30 = arith.constant 0 : i32
    %70 = arith.cmpi ne, %69, %c0_i32_30 : i32
    scf.if %70 {
      %71 = vector.extract_strided_slice %64 {offsets = [0, 0, 0], sizes = [6, 1, 32], strides = [1, 1, 1]} : vector<6x8x32xf32> to vector<6x1x32xf32>
      %72 = vector.shape_cast %71 : vector<6x1x32xf32> to vector<6x32xf32>
      %c0_31 = arith.constant 0 : index
      %c0_32 = arith.constant 0 : index
      %73 = vector.load %arg7[%c0_31, %c0_32] : memref<6x32xf32, #tpu.memory_space<vmem>>, vector<6x32xf32>
      tpu.vector_store %arg7[%c0_31, %c0_32], %72 {strides = array<i32>} : memref<6x32xf32, #tpu.memory_space<vmem>>, vector<6x32xf32>,
    } else {
    }
    return
  }
  func.func @transform_0(%arg0: i32, %arg1: i32) -> (i32, i32, i32) {
    %c0_i32 = arith.constant 0 : i32
    %c0_i32_0 = arith.constant 0 : i32
    %c0_i32_1 = arith.constant 0 : i32
    return %arg0, %c0_i32, %c0_i32_0 : i32, i32, i32
  }
  func.func @transform_1(%arg0: i32, %arg1: i32) -> (i32, i32, i32) {
    %c0_i32 = arith.constant 0 : i32
    %c0_i32_0 = arith.constant 0 : i32
    %c0_i32_1 = arith.constant 0 : i32
    return %arg0, %c0_i32, %c0_i32_0 : i32, i32, i32
  }
  func.func @transform_2(%arg0: i32, %arg1: i32) -> (i32, i32, i32) {
    %c0_i32 = arith.constant 0 : i32
    %c0_i32_0 = arith.constant 0 : i32
    %c0_i32_1 = arith.constant 0 : i32
    return %arg1, %c0_i32, %c0_i32_0 : i32, i32, i32
  }
  func.func @transform_3(%arg0: i32, %arg1: i32) -> (i32, i32, i32) {
    %c0_i32 = arith.constant 0 : i32
    %c0_i32_0 = arith.constant 0 : i32
    %c0_i32_1 = arith.constant 0 : i32
    return %arg1, %c0_i32, %c0_i32_0 : i32, i32, i32
  }
  func.func @transform_4(%arg0: i32, %arg1: i32) -> (i32, i32, i32) {
    %c0_i32 = arith.constant 0 : i32
    %c0_i32_0 = arith.constant 0 : i32
    %c0_i32_1 = arith.constant 0 : i32
    return %arg1, %c0_i32, %c0_i32_0 : i32, i32, i32
  }
  func.func @transform_5(%arg0: i32, %arg1: i32) -> (i32, i32) {
    %c0_i32 = arith.constant 0 : i32
    %c0_i32_0 = arith.constant 0 : i32
    return %arg0, %c0_i32 : i32, i32
  }
}

</mosaic_0001>

<bundles_post_ra>
// kernel: tpu_custom_call.1
= control target key start
LH: loop header
LB: loop body
LE: loop exit
PB: predicated region body
PF: predicated region fallthrough
CT: control target
= control target key end

     0   :  { %10 = vsyncpa [#allocation4], 0  ;;  %s1969_s0 = inlined_call_operand.hbm [shape: f32[6,8,32], index: 0, kind: input, shape index: {}]   ;;  %s1970_s1 = inlined_call_operand.vmem [shape: f32[6,8,1], index: 1, kind: input, shape index: {}]   ;;  %s1971_s2 = inlined_call_operand.hbm [shape: f32[2,32,96], index: 2, kind: input, shape index: {}]   ;;  %s1972_s3 = inlined_call_operand.vmem [shape: f32[2,32,32], index: 3, kind: input, shape index: {}]   ;;  %s1973_s4 = inlined_call_operand.vmem [shape: f32[2,2,32], index: 4, kind: input, shape index: {}]   ;;  %s1974_s5 = inlined_call_operand.hbm [shape: f32[6,32], index: 5, kind: output, shape index: {}]  }
   0x1   :  { %11 = vsyncpa [#allocation7], 0 }
   0x2   :  { %13 = vsyncpa [#allocation7 + $0x1], 0 }
   0x3   :  { %14 = vsyncpa [#allocation5], 0  ;;  %s1528_s18 = smov 0   ;;  %s1530_s19 = smov 0  }
   0x4   :  { %s1532_s20 = smov 0   ;;  %s1534_s21 = smov 0  }
   0x5   :  { %s1536_s22 = smov 0   ;;  %s1538_s23 = smov 0  }
   0x6 LB: > { %s1113_s24 = sadd.s32 4294967295, %s1488_s23   ;;  %p104_p0 = scmp.ne.s32.totalorder %s1472_s19, %s1468_s18  ;;  %s1488_s23 = sphi %s1538_s23, %s20_s23   ;;  %s1484_s22 = sphi %s1536_s22, %s1992_s22   ;;  %s1480_s21 = sphi %s1534_s21, %s1991_s21   ;;  %s1476_s20 = sphi %s1532_s20, %s1990_s20   ;;  %s1472_s19 = sphi %s1530_s19, %s1989_s19   ;;  %s1468_s18 = sphi %s1528_s18, %s1988_s18  }
   0x7   : > { %p1560_p1 = scmp.eq.s32.totalorder %s1113_s24, 0  ;;  %p1114_p2 = scmp.ge.s32.totalorder %s1488_s23, 1 }
   0x8   : > { %p193_p3 = scmp.lt.s32.totalorder %s1488_s23, 3  ;;  %s1490_s28 = smov [#allocation3]  }
   0x9   : > { %s1979_s25 = scalar_select %p1560_p1, 1, 0 }
   0xa   : > { %p1568_p4 = por %p1560_p1, %p104_p0  ;;  %p1572_p5 = pnand %p1114_p2, %p193_p3 }
   0xb   : > { %s208_s29 = sshll.u32 %s1490_s28, 4  ;;  %s29_s6 = sadd.s32 1, %s1484_s22  ;;  %s209_s29 = int_to_ptr.vmem [resolvable:$true] %s208_s29 }
   0xc   : > { %s1980_s26 = scalar_select %p1568_p4, 1, 0 }
   0xd   : > { %s1981_s27 = scalar_select %p1572_p5, 1, 0 }
   0xe   : > { %p1228_p6 = pneg %p1572_p5  ;;  %s1346_s9 = scalar_lea.hbm %s1969_s0, 768 }
   0xf   : > { %p1347_p8 = scmp.ne.s32.totalorder %s1969_s0, %s1346_s9  ;;  %p1353_p12 = scmp.lt.u32.totalorder %s1346_s9, %s1969_s0 }
  0x10   : > { %p1580_p7 = pnand %p1228_p6, %p1560_p1 }
  0x12   : > { %p1348_p9 = pneg %p1580_p7 }
  0x14   : > { %p1349_p10 = pnand %p1348_p9, %p1347_p8 }
  0x16   : > { %p1350_p11 = pneg %p1349_p10 }
  0x18   : > { %p1355_p13 = pnand %p1353_p12, %p1350_p11 }
  0x1a   : > { %1358 = shalt.err (!%p1355_p13)
}
  0x1b   : > { %s1359_s14 = scalar_lea.vmem %s209_s29, 768  ;;  %p1367_p6 = scmp.lt.s32.totalorder %s209_s29, %s209_s29 }
  0x1c   : > { %p1360_p0 = scmp.ne.s32.totalorder %s209_s29, %s1359_s14  ;;  %p1368_p4 = scmp.lt.s32.totalorder %s1359_s14, %s1359_s14 }
  0x1e   : > { %p1362_p2 = pnand %p1360_p0, %p1348_p9  ;;  %p1369_p1 = por %p1368_p4, %p1367_p6 }
  0x20   : > { %p1363_p3 = pneg %p1362_p2 }
  0x22   : > { %p1370_p5 = pnand %p1369_p1, %p1363_p3 }
  0x24   : > { %1373 = shalt.err (!%p1370_p5)
}
  0x25   : > { %s1491_s15 = smov 128   ;;  %s1492_s16 = smov 8  }
  0x26   : > { %1231 = dma.hbm_to_vmem [thread:$0]  (!%p1580_p7), %s1969_s0, 768, %s209_s29, [#allocation4], %s1491_s15, %s1491_s15, %s1492_s16  }
  0x27   : > { %p30_p1 = scmp.ge.s32.totalorder %s29_s6, 2  ;;  %s91_s28 = sadd.s32 1, %s1476_s20 }
  0x28   : > { %p98_p4 = scmp.ne.s32.totalorder %s1476_s20, %s1472_s19  ;;  %p99_p5 = scmp.eq.s32.totalorder %s1488_s23, 0 }
  0x29   : > { %s1994_s6 = smov (%p30_p1, %s29_s6), 0  ;;  %p1237_p9 = scmp.lt.s32.totalorder %s1488_s23, 2 }
  0x2a   : > { %p100_p8 = por %p99_p5, %p98_p4  ;;  %s88_s7 = ssub.s32 %s1484_s22, %s1994_s6 }
  0x2b   : > { %s231_s8 = sand.u32 1, %s1476_s20   ;;  %p89_p10 = scmp.eq.s32.totalorder %s88_s7, 0 }
  0x2c   : > { %s1118_s30 = sshll.u32 %s231_s8, 5  ;;  %s1146_s9 = sshll.u32 %s1484_s22, 9 }
  0x2d   : > { %s1616_s10 = scalar_select %p89_p10, %s1476_s20, %s91_s28  }
  0x2e   : > { %s1621_s29 = scalar_lea.hbm %s1971_s2, %s1146_s9  ;;  %s235_s13 = scalar_lea.vmem [#allocation6], %s1118_s30 }
  0x2f   : > { %s242_s14 = sshll.u32 %s235_s13, 4  ;;  %p1623_p7 = pnand %p1237_p9, %p100_p8  ;;  %s1627_s14 = int_to_ptr.vmem [resolvable:$true] %s242_s14 }
  0x30   : > { %s1629_s18 = scalar_lea.sflag [#allocation7], %s231_s8  ;;  %s1374_s28 = scalar_lea.hbm %s1621_s29, 512 }
  0x31   : > { %p1375_p11 = scmp.ne.s32.totalorder %s1621_s29, %s1374_s28  ;;  %p1376_p12 = pneg %p1623_p7 }
  0x32   : > { %s1379_s9 = scalar_lea.hbm %s1971_s2, 1024  ;;  %p1380_p2 = scmp.lt.u32.totalorder %s1621_s29, %s1971_s2 }
  0x33   : > { %p1377_p13 = pnand %p1376_p12, %p1375_p11  ;;  %p1381_p3 = scmp.lt.u32.totalorder %s1379_s9, %s1374_s28 }
  0x34   : > { %p1383_p1 = scmp.lt.u32.totalorder %s1374_s28, %s1621_s29 }
  0x35   : > { %p1378_p0 = pneg %p1377_p13  ;;  %p1382_p6 = por %p1381_p3, %p1380_p2 }
  0x37   : > { %p1384_p4 = por %p1383_p1, %p1382_p6 }
  0x39   : > { %p1385_p5 = pnand %p1384_p4, %p1378_p0 }
  0x3b   : > { %1388 = shalt.err (!%p1385_p5)
}
  0x3c   : > { %s1389_s8 = scalar_lea.vmem %s1627_s14, 512  ;;  %s1493_s13 = smov [#allocation6]  }
  0x3d   : > { %p1390_p8 = scmp.ne.s32.totalorder %s1627_s14, %s1389_s8  ;;  %s1394_s7 = sshll.u32 %s1493_s13, 4  ;;  %s1395_s7 = int_to_ptr.vmem [resolvable:$false] %s1394_s7 }
  0x3e   : > { %s1396_s30 = scalar_lea.vmem %s1395_s7, 1024  ;;  %p1397_p11 = scmp.lt.s32.totalorder %s1627_s14, %s1395_s7 }
  0x3f   : > { %p1392_p9 = pnand %p1390_p8, %p1376_p12  ;;  %p1398_p13 = scmp.lt.s32.totalorder %s1396_s30, %s1389_s8 }
  0x41   : > { %p1393_p10 = pneg %p1392_p9  ;;  %p1399_p2 = por %p1398_p13, %p1397_p11 }
  0x43   : > { %p1400_p3 = pnand %p1399_p2, %p1393_p10 }
  0x45   : > { %1403 = shalt.err (!%p1400_p3)
}
  0x46   : > { %1235 = dma.hbm_to_vmem [thread:$0]  (!%p1623_p7), %s1621_s29, 512, %s1627_s14, %s1629_s18, %s1491_s15, %s1491_s15, %s1492_s16  }
  0x47   : > { %p1984_p12 = scmp.ne.s32.totalorder %s1981_s27, 0 }
  0x48   : > { %p1985_p0 = scmp.ne.s32.totalorder (!%p1984_p12), %s1979_s25, 0 }
  0x49   : > { %269 = sbr.rel (%p1984_p12) target bundleno = 1324 (0x52c), region = 40 }
  0x50   : > { %1455 = dma.done.wait (%p1985_p0), [#allocation4], 768  }
  0x51   : > { %1457 = vsyncadd (%p1985_p0), [#allocation4], 4294966528  ;;  %s275_s28 = sand.u32 1, %s1472_s19   ;;  %p1986_p6 = scmp.ne.s32.totalorder %s1980_s26, 0 }
  0x52   : > { %s1123_s17 = sshll.u32 %s275_s28, 5  ;;  %s276_s9 = scalar_lea.sflag [#allocation7], %s275_s28 }
  0x53   : > { %s279_s11 = scalar_lea.vmem [#allocation6], %s1123_s17 }
  0x54   : > { %1459 = dma.done.wait (%p1986_p6), %s276_s9, 512  }
  0x55   : > { %1461 = vsyncadd (%p1986_p6), %s276_s9, 4294966784  ;;  %p322_p7 = scmp.lt.s32.totalorder %s1480_s21, 1  ;;  %p1127_p1 = scmp.ne.s32.totalorder %s1480_s21, 0 }
  0x56   : > { %v335_v0 = vld [vmem:[#allocation3] sm:$0xff] (!%p1127_p1)  ;;  %vm341_vm0 = vcmask (!%p1127_p1), 261120   ;;  %v336_v1 = vld [vmem:[#allocation3 + $0x8] sm:$0xff] (!%p1127_p1)  ;;  %v337_v2 = vld [vmem:[#allocation3 + $0x10] sm:$0xff] (!%p1127_p1) }
  0x57   : > { %s323_s27 = scalar_select %p322_p7, %s1480_s21, 1 }
  0x58   : > { %334 = sbr.rel (%p1127_p1) target bundleno = 95 (0x5f), region = 52  ;;  %342 = vst.msk [vmem:[#allocation2] sm:$0xff] (!%p1127_p1), %vm341_vm0, %v335_v0  ;;  %343 = vst.msk [vmem:[#allocation2 + $0x8] sm:$0xff] (!%p1127_p1), %vm341_vm0, %v336_v1  ;;  %v338_v3 = vld [vmem:[#allocation3 + $0x18] sm:$0xff] (!%p1127_p1)  ;;  %v339_v4 = vld [vmem:[#allocation3 + $0x20] sm:$0xff] (!%p1127_p1) }
  0x59   : > { %s1147_s15 = sshll.u32 %s323_s27, 5  ;;  %s1126_s16 = sshll.u32 %s323_s27, 1  ;;  %344 = vst.msk [vmem:[#allocation2 + $0x10] sm:$0xff] (!%p1127_p1), %vm341_vm0, %v337_v2  ;;  %v340_v5 = vld [vmem:[#allocation3 + $0x28] sm:$0xff] (!%p1127_p1)  ;;  %345 = vst.msk [vmem:[#allocation2 + $0x18] sm:$0xff] (!%p1127_p1), %vm341_vm0, %v338_v3 }
  0x5a   : > { %s1676_s14 = scalar_lea.vmem %s1972_s3, %s1147_s15  ;;  %s1681_s8 = scalar_lea.vmem %s1973_s4, %s1126_s16  ;;  %346 = vst.msk [vmem:[#allocation2 + $0x20] sm:$0xff] (!%p1127_p1), %vm341_vm0, %v339_v4  ;;  %347 = vst.msk [vmem:[#allocation2 + $0x28] sm:$0xff] (!%p1127_p1), %vm341_vm0, %v340_v5 }
  0x5f PF: > { %v367_v6 = vld [vmem:[%s279_s11] sm:$0xff]  ;;  %v368_v7 = vld [vmem:[%s279_s11 + $0x8] sm:$0xff]  ;;  %v369_v8 = vld [vmem:[%s279_s11 + $0x10] sm:$0xff]  ;;  %vm371_vm1 = vcmask 261120   ;;  %v1494_v12 = vmov 0   ;;  %v485_v31 = vlaneseq  ;;  %s1495_s25 = smov 96  }
  0x60   : > { %v1202_v9 = vpack.c.bf16 %v368_v7, %v367_v6  ;;  %v370_v10 = vld [vmem:[%s279_s11 + $0x18] sm:$0xff]  ;;  %v348_v11 = vld [vmem:[#allocation2] sm:$0xff]  ;;  %1296 = vset.pattern.permute.xlu0 %v1494_v12  ;;  %1297 = vset.pattern.permute.xlu1 %v1494_v12  ;;  %v356_v15 = vld [vmem:[%s1970_s1 + $0x10] sm:$0xff]  ;;  %s1496_s18 = smov 64   ;;  %p1140_p4 = scmp.ge.s32.totalorder %s1480_s21, 1 }
  0x61   : > { %v1206_v13 = vpack.c.bf16 %v370_v10, %v369_v8  ;;  %1176 = vmatprep.mubr.msk.f32.mxu0 %vm371_vm1, %v348_v11  ;;  %v354_v14 = vld [vmem:[%s1970_s1] sm:$0xff]  ;;  %vm362_vm3 = vcmp.gt.f32.partialorder %v356_v15, 0.5  ;;  %v355_v16 = vld [vmem:[%s1970_s1 + $0x8] sm:$0xff]  ;;  %v357_v17 = vld [vmem:[%s1970_s1 + $0x18] sm:$0xff]  ;;  %v1708_v32 = vshrl.u32 %v485_v31, 7 }
  0x62   : > { %1203 = vmatprep.subr.bf16.mxu0 %v1202_v9  ;;  %vm360_vm2 = vcmp.gt.f32.partialorder %v354_v14, 0.5  ;;  %v497_v19 = vsel %vm362_vm3, 1, %v1494_v12  ;;  %vm361_vm4 = vcmp.gt.f32.partialorder %v355_v16, 0.5  ;;  %vm363_vm5 = vcmp.gt.f32.partialorder %v357_v17, 0.5  ;;  %v358_v20 = vld [vmem:[%s1970_s1 + $0x20] sm:$0xff]  ;;  %v359_v21 = vld [vmem:[%s1970_s1 + $0x28] sm:$0xff] }
  0x63   : > { %1205 = vmatpush3.bf16.msra.mxu0 %v1202_v9  ;;  %v495_v18 = vsel %vm360_vm2, 1, %v1494_v12  ;;  %508 = vperm.xlu1 %1297, %v497_v19   ;;  %v496_v22 = vsel %vm361_vm4, 1, %v1494_v12  ;;  %v498_v23 = vsel %vm363_vm5, 1, %v1494_v12  ;;  %v349_v24 = vld [vmem:[#allocation2 + $0x8] sm:$0xff]  ;;  %vm364_vm6 = vcmp.gt.f32.partialorder %v358_v20, 0.5  ;;  %v350_v25 = vld [vmem:[#allocation2 + $0x10] sm:$0xff] }
  0x64   : > { %1207 = vmatprep.subr.bf16.mxu0 %v1206_v13  ;;  %502 = vperm.xlu0 %1296, %v495_v18   ;;  %vm365_vm7 = vcmp.gt.f32.partialorder %v359_v21, 0.5  ;;  %v499_v26 = vsel %vm364_vm6, 1, %v1494_v12  ;;  %v351_v28 = vld [vmem:[#allocation2 + $0x18] sm:$0xff]  ;;  %v352_v29 = vld [vmem:[#allocation2 + $0x20] sm:$0xff]  ;;  %v353_v30 = vld [vmem:[#allocation2 + $0x28] sm:$0xff]  ;;  %v487_v34 = vsub.s32 0, %v1708_v32 }
  0x65   : > { %v500_v27 = vsel %vm365_vm7, 1, %v1494_v12  ;;  %v1714_v35 = vld [vmem:[%s1681_s8] sm:$0x3] }
  0x66   : > { %v488_v36 = vrot.slane %v1714_v35, %v487_v34 }
  0x67   : > { %1209 = vmatpush3.bf16.msra.mxu0 %v1206_v13  ;;  %511 = vperm.xlu1 %1297, %v498_v23  }
  0x68   : > { %505 = vperm.xlu0 %1296, %v496_v22  }
  0x6a   : > { %1177 = vmatmul.mubr.msk.f32.vlgmr.msra.gmra.mrb[0].mxu0 %vm371_vm1, %v349_v24 }
  0x6b   : > { %1179 = vmatprep.mubr.msk.f32.mxu0 %vm371_vm1, %v350_v25  ;;  %517 = vperm.xlu1 %1297, %v500_v27  }
  0x6c   : > { %514 = vperm.xlu0 %1296, %v499_v26  }
  0x6e   : > { %1180 = vmatmul.mubr.msk.f32.gmra.mrb[2].mxu0 %vm371_vm1, %v351_v28 }
  0x6f   : > { %1182 = vmatprep.mubr.msk.f32.mxu0 %vm371_vm1, %v352_v29 }
  0x72   : > { %1183 = vmatmul.mubr.msk.f32.gmra.mrb[4].mxu0 %vm371_vm1, %v353_v30 }
  0xe2   : > { %v1717_v37 = vpop.permute.xlu1 %508 }
  0xe3   : > { %v1710_v33 = vpop.permute.xlu0 %502  ;;  %vm521_vm10 = vcmp.eq.s32.totalorder %v1717_v37, 1 }
  0xe4   : > { %vm519_vm9 = vcmp.eq.s32.totalorder %v1710_v33, 1 }
  0xe6   : > { %v1731_v44 = vpop.permute.xlu1 %511 }
  0xe7   : > { %v1719_v38 = vpop.permute.xlu0 %505  ;;  %vm522_vm11 = vcmp.eq.s32.totalorder %v1731_v44, 1 }
  0xe8   : > { %vm520_vm8 = vcmp.eq.s32.totalorder %v1719_v38, 1 }
  0xea   : > { %v1754_v57 = vpop.permute.xlu1 %517 }
  0xeb   : > { %v1745_v52 = vpop.permute.xlu0 %514  ;;  %vm524_vm13 = vcmp.eq.s32.totalorder %v1754_v57, 1 }
  0xec   : > { %vm523_vm12 = vcmp.eq.s32.totalorder %v1745_v52, 1 }
 0x13d   : > { %v1722_v39 = vpop.f32.mrb[0].mxu0 }
 0x13e   : > { %v1725_v40 = vpop.f32.mrb[1].mxu0  ;;  %v490_v41 = vmul.f32 %v1722_v39, %v488_v36 }
 0x13f   : > { %v489_v42 = vmul.f32 %v488_v36, %v1725_v40 }
 0x140   : > { %v526_v43 = vsel %vm520_vm8, -3.4028235e+38, %v490_v41 }
 0x141   : > { %v1733_v45 = vpop.f32.mrb[2].mxu0  ;;  %v534_v46 = vsel %vm371_vm1, %v526_v43, -inf  ;;  %v525_v47 = vsel %vm519_vm9, -3.4028235e+38, %v489_v42 }
 0x142   : > { %535 = vmax.xlane.f32.xlu1 %v534_v46  ;;  %v1739_v48 = vpop.f32.mrb[3].mxu0  ;;  %v531_v49 = vsel %vm371_vm1, %v525_v47, -inf  ;;  %v492_v51 = vmul.f32 %v1733_v45, %v488_v36 }
 0x143   : > { %532 = vmax.xlane.f32.xlu0 %v531_v49  ;;  %v491_v50 = vmul.f32 %v488_v36, %v1739_v48 }
 0x144   : > { %v528_v58 = vsel %vm522_vm11, -3.4028235e+38, %v492_v51 }
 0x145   : > { %v1747_v53 = vpop.f32.mrb[4].mxu0  ;;  %v527_v54 = vsel %vm521_vm10, -3.4028235e+38, %v491_v50  ;;  %v540_v62 = vsel %vm371_vm1, %v528_v58, -inf }
 0x146   : > { %v1751_v55 = vpop.f32.mrb[5].mxu0  ;;  %v537_v56 = vsel %vm371_vm1, %v527_v54, -inf  ;;  %v494_v60 = vmul.f32 %v1747_v53, %v488_v36 }
 0x147   : > { %538 = vmax.xlane.f32.xlu0 %v537_v56  ;;  %v493_v59 = vmul.f32 %v488_v36, %v1751_v55 }
 0x148   : > { %v530_v0 = vsel %vm524_vm13, -3.4028235e+38, %v494_v60 }
 0x149   : > { %v529_v61 = vsel %vm523_vm12, -3.4028235e+38, %v493_v59  ;;  %v546_v1 = vsel %vm371_vm1, %v530_v0, -inf }
 0x14a   : > { %v543_v63 = vsel %vm371_vm1, %v529_v61, -inf }
 0x14b   : > { %541 = vmax.xlane.f32.xlu0 %v540_v62  ;;  %544 = vmax.xlane.f32.xlu1 %v543_v63 }
 0x14f   : > { %547 = vmax.xlane.f32.xlu0 %v546_v1  ;;  %v677_v1 = vsub.s32 1, %v1708_v32 }
 0x1cf   : > { %v536_v2 = vpop.xlane.xlu1 %535 }
 0x1d0   : > { %v550_v3 = vsub.f32 %v526_v43, %v536_v2  ;;  %v533_v4 = vpop.xlane.xlu0 %532 }
 0x1d1   : > { %v549_v5 = vsub.f32 %v525_v47, %v533_v4 }
 0x1d2   : > { %v557_v6 = vmul.f32 1.442695, %v550_v3 }
 0x1d3   : > { %v555_v7 = vmul.f32 1.442695, %v549_v5 }
 0x1d4   : > { %1298 = vpow2.f32 %v557_v6  ;;  %v539_v8 = vpop.xlane.xlu0 %538 }
 0x1d5   : > { %1300 = vpow2.f32 %v555_v7  ;;  %v551_v9 = vsub.f32 %v527_v54, %v539_v8  ;;  %v1796_v7 = vrot.slane %v1714_v35, %v677_v1 }
 0x1d7   : > { %v559_v10 = vmul.f32 1.442695, %v551_v9 }
 0x1d8   : > { %v542_v11 = vpop.xlane.xlu0 %541  ;;  %v545_v27 = vpop.xlane.xlu1 %544 }
 0x1d9   : > { %1302 = vpow2.f32 %v559_v10  ;;  %v552_v12 = vsub.f32 %v528_v58, %v542_v11  ;;  %v553_v28 = vsub.f32 %v529_v61, %v545_v27 }
 0x1db   : > { %v561_v13 = vmul.f32 1.442695, %v552_v12  ;;  %v563_v29 = vmul.f32 1.442695, %v553_v28 }
 0x1dc   : > { %v548_v14 = vpop.xlane.xlu0 %547 }
 0x1dd   : > { %1304 = vpow2.f32 %v561_v13  ;;  %v554_v15 = vsub.f32 %v530_v0, %v548_v14 }
 0x1de   : > { %v1299_v16 = vpop.eup %1298 }
 0x1df   : > { %v1301_v17 = vpop.eup %1300  ;;  %v565_v18 = vmul.f32 1.442695, %v554_v15  ;;  %v570_v19 = vsel %vm371_vm1, %v1299_v16, 0.0 }
 0x1e0   : > { %571 = vadd.xlane.f32.xlu0 %v570_v19  ;;  %v567_v20 = vsel %vm371_vm1, %v1301_v17, 0.0 }
 0x1e1   : > { %1306 = vpow2.f32 %v565_v18  ;;  %568 = vadd.xlane.f32.xlu1 %v567_v20 }
 0x1e2   : > { %1308 = vpow2.f32 %v563_v29 }
 0x1e3   : > { %v1303_v21 = vpop.eup %1302 }
 0x1e4   : > { %v573_v22 = vsel %vm371_vm1, %v1303_v21, 0.0 }
 0x1e5   : > { %574 = vadd.xlane.f32.xlu1 %v573_v22 }
 0x1e7   : > { %v1772_v23 = vpop.eup %1304 }
 0x1e8   : > { %v576_v24 = vsel %vm371_vm1, %v1772_v23, 0.0 }
 0x1e9   : > { %577 = vadd.xlane.f32.xlu0 %v576_v24 }
 0x1eb   : > { %v1776_v25 = vpop.eup %1306 }
 0x1ec   : > { %v582_v26 = vsel %vm371_vm1, %v1776_v25, 0.0  ;;  %v1783_v30 = vpop.eup %1308 }
 0x1ed   : > { %583 = vadd.xlane.f32.xlu0 %v582_v26  ;;  %v579_v31 = vsel %vm371_vm1, %v1783_v30, 0.0 }
 0x1f6   : > { %651 = vrot.lane.b32.xlu1 %v1725_v40, %s1495_s25 }
 0x203   : > { %653 = vrot.lane.b32.xlu0 %v1722_v39, %s1495_s25 }
 0x207   : > { %659 = vrot.lane.b32.xlu0 %v1751_v55, %s1495_s25 }
 0x21a   : > { %580 = vadd.xlane.f32.xlu1 %v579_v31 }
 0x22b   : > { %655 = vrot.lane.b32.xlu1 %v1739_v48, %s1495_s25 }
 0x22f   : > { %657 = vrot.lane.b32.xlu1 %v1733_v45, %s1495_s25 }
 0x233   : > { %661 = vrot.lane.b32.xlu1 %v1747_v53, %s1495_s25 }
 0x26d   : > { %v572_v34 = vpop.xlane.xlu0 %571 }
 0x26e   : > { %1310 = vrcp.f32 %v572_v34  ;;  %v569_v36 = vpop.xlane.xlu1 %568 }
 0x26f   : > { %1312 = vrcp.f32 %v569_v36 }
 0x272   : > { %v575_v47 = vpop.xlane.xlu1 %574 }
 0x273   : > { %1314 = vrcp.f32 %v575_v47 }
 0x276   : > { %v578_v51 = vpop.xlane.xlu0 %577  ;;  %v652_v11 = vpop.permute.xlu1 %651 }
 0x277   : > { %1316 = vrcp.f32 %v578_v51 }
 0x278   : > { %v1311_v41 = vpop.eup %1310 }
 0x279   : > { %v1313_v42 = vpop.eup %1312  ;;  %v588_v43 = vmul.f32 %v1311_v41, %v1299_v16 }
 0x27a   : > { %v586_v46 = vmul.f32 %v1313_v42, %v1301_v17  ;;  %v584_v0 = vpop.xlane.xlu0 %583 }
 0x27b   : > { %v598_v49 = vmul.f32 %v1722_v39, %v588_v43  ;;  %1318 = vrcp.f32 %v584_v0 }
 0x27c   : > { %v597_v50 = vmul.f32 %v586_v46, %v1725_v40 }
 0x27d   : > { %v610_v54 = vsel %vm371_vm1, %v598_v49, 0.0  ;;  %v1315_v6 = vpop.eup %1314 }
 0x27e   : > { %v603_v56 = vsel %vm371_vm1, %v597_v50, 0.0  ;;  %v611_v58 = vrot.slane %v610_v54, 4  ;;  %v654_v10 = vpop.permute.xlu0 %653  ;;  %v590_v14 = vmul.f32 %v1315_v6, %v1303_v21 }
 0x27f   : > { %v604_v59 = vrot.slane %v603_v56, 4 }
 0x280   : > { %v612_v60 = vadd.f32 %v611_v58, %v610_v54  ;;  %v599_v19 = vmul.f32 %v590_v14, %v1739_v48 }
 0x281   : > { %v605_v61 = vadd.f32 %v604_v59, %v603_v56  ;;  %v1317_v15 = vpop.eup %1316 }
 0x282   : > { %v613_v62 = vrot.slane %v612_v60, 2  ;;  %v592_v20 = vmul.f32 %v1317_v15, %v1772_v23  ;;  %v617_v38 = vsel %vm371_vm1, %v599_v19, 0.0 }
 0x283   : > { %v606_v63 = vrot.slane %v605_v61, 2  ;;  %v618_v27 = vrot.slane %v617_v38, 4 }
 0x284   : > { %v614_v2 = vadd.f32 %v613_v62, %v612_v60  ;;  %v600_v24 = vmul.f32 %v1733_v45, %v592_v20 }
 0x285   : > { %v607_v3 = vadd.f32 %v606_v63, %v605_v61  ;;  %v1319_v21 = vpop.eup %1318  ;;  %v619_v29 = vadd.f32 %v618_v27, %v617_v38 }
 0x286   : > { %v615_v4 = vrot.slane %v614_v2, 1  ;;  %v596_v26 = vmul.f32 %v1319_v21, %v1776_v25  ;;  %v624_v33 = vsel %vm371_vm1, %v600_v24, 0.0 }
 0x287   : > { %v608_v5 = vrot.slane %v607_v3, 1  ;;  %v625_v31 = vrot.slane %v624_v33, 4  ;;  %v620_v34 = vrot.slane %v619_v29, 2 }
 0x288   : > { %v616_v8 = vadd.f32 %v615_v4, %v614_v2  ;;  %v602_v28 = vmul.f32 %v1747_v53, %v596_v26 }
 0x289   : > { %v609_v9 = vadd.f32 %v608_v5, %v607_v3  ;;  %v626_v36 = vadd.f32 %v625_v31, %v624_v33  ;;  %v621_v42 = vadd.f32 %v620_v34, %v619_v29 }
 0x28a   : > { %v1798_v12 = vmul.f32 %v654_v10, %v616_v8  ;;  %v638_v23 = vsel %vm371_vm1, %v602_v28, 0.0 }
 0x28b   : > { %v1800_v13 = vmul.f32 %v652_v11, %v609_v9  ;;  %v639_v41 = vrot.slane %v638_v23, 4  ;;  %v627_v43 = vrot.slane %v626_v36, 2  ;;  %v622_v47 = vrot.slane %v621_v42, 1 }
 0x28c   : > { %v680_v32 = vmul.f32 %v1796_v7, %v1798_v12 }
 0x28d   : > { %v679_v16 = vmul.f32 %v1796_v7, %v1800_v13  ;;  %v640_v46 = vadd.f32 %v639_v41, %v638_v23  ;;  %v628_v49 = vadd.f32 %v627_v43, %v626_v36  ;;  %v623_v25 = vadd.f32 %v622_v47, %v621_v42 }
 0x28e   : > { %v1808_v35 = vsel %vm520_vm8, -3.4028235e+38, %v680_v32 }
 0x28f   : > { %v694_v17 = vsel %vm371_vm1, %v1808_v35, -inf  ;;  %v1814_v18 = vsel %vm519_vm9, -3.4028235e+38, %v679_v16  ;;  %v641_v50 = vrot.slane %v640_v46, 2  ;;  %v629_v54 = vrot.slane %v628_v49, 1 }
 0x290   : > { %695 = vmax.xlane.f32.xlu1 %v694_v17  ;;  %v691_v22 = vsel %vm371_vm1, %v1814_v18, -inf }
 0x291   : > { %692 = vmax.xlane.f32.xlu0 %v691_v22  ;;  %v642_v56 = vadd.f32 %v641_v50, %v640_v46  ;;  %v630_v61 = vadd.f32 %v629_v54, %v628_v49  ;;  %v660_v22 = vpop.permute.xlu0 %659 }
 0x293   : > { %v643_v62 = vrot.slane %v642_v56, 1 }
 0x295   : > { %v644_v5 = vadd.f32 %v643_v62, %v642_v56  ;;  %v830_v62 = vld [vmem:[%s1676_s14 + $0x8] sm:$0xff] }
 0x2a7   : > { %v581_v51 = vpop.xlane.xlu1 %580 }
 0x2a8   : > { %1320 = vrcp.f32 %v581_v51 }
 0x2ab   : > { %v656_v58 = vpop.permute.xlu1 %655 }
 0x2ac   : > { %v1826_v59 = vmul.f32 %v656_v58, %v623_v25 }
 0x2ae   : > { %v681_v60 = vmul.f32 %v1796_v7, %v1826_v59 }
 0x2af   : > { %v658_v63 = vpop.permute.xlu1 %657 }
 0x2b0   : > { %v1830_v0 = vmul.f32 %v658_v63, %v630_v61  ;;  %v687_v1 = vsel %vm521_vm10, -3.4028235e+38, %v681_v60  ;;  %v829_v61 = vld [vmem:[%s1676_s14] sm:$0xff] }
 0x2b1   : > { %v697_v2 = vsel %vm371_vm1, %v687_v1, -inf  ;;  %v1210_v63 = vpack.c.bf16 %v830_v62, %v829_v61 }
 0x2b2   : > { %v1321_v3 = vpop.eup %1320  ;;  %v682_v4 = vmul.f32 %v1796_v7, %v1830_v0  ;;  %698 = vmax.xlane.f32.xlu0 %v697_v2  ;;  %v832_v2 = vld [vmem:[%s1676_s14 + $0x18] sm:$0xff] }
 0x2b3   : > { %v594_v6 = vmul.f32 %v1321_v3, %v1783_v30  ;;  %v662_v8 = vpop.permute.xlu1 %661  ;;  %1211 = vmatprep.subr.bf16.mxu1 %v1210_v63 }
 0x2b4   : > { %v1838_v9 = vmul.f32 %v662_v8, %v644_v5  ;;  %v688_v10 = vsel %vm522_vm11, -3.4028235e+38, %v682_v4  ;;  %1213 = vmatpush3.bf16.msra.mxu1 %v1210_v63 }
 0x2b5   : > { %v601_v11 = vmul.f32 %v594_v6, %v1751_v55  ;;  %v700_v37 = vsel %vm371_vm1, %v688_v10, -inf }
 0x2b6   : > { %v684_v14 = vmul.f32 %v1796_v7, %v1838_v9  ;;  %701 = vmax.xlane.f32.xlu0 %v700_v37 }
 0x2b7   : > { %v631_v15 = vsel %vm371_vm1, %v601_v11, 0.0 }
 0x2b8   : > { %v690_v32 = vsel %vm524_vm13, -3.4028235e+38, %v684_v14  ;;  %v632_v30 = vrot.slane %v631_v15, 4 }
 0x2b9   : > { %v706_v16 = vsel %vm371_vm1, %v690_v32, -inf }
 0x2ba   : > { %707 = vmax.xlane.f32.xlu0 %v706_v16  ;;  %v633_v17 = vadd.f32 %v632_v30, %v631_v15 }
 0x2bc   : > { %v634_v44 = vrot.slane %v633_v17, 2 }
 0x2be   : > { %v635_v19 = vadd.f32 %v634_v44, %v633_v17 }
 0x2c0   : > { %v636_v20 = vrot.slane %v635_v19, 1 }
 0x2c2   : > { %v637_v21 = vadd.f32 %v636_v20, %v635_v19 }
 0x2c4   : > { %v1850_v38 = vmul.f32 %v660_v22, %v637_v21 }
 0x2c6   : > { %v683_v24 = vmul.f32 %v1796_v7, %v1850_v38 }
 0x2c8   : > { %v689_v26 = vsel %vm523_vm12, -3.4028235e+38, %v683_v24 }
 0x2c9   : > { %v703_v57 = vsel %vm371_vm1, %v689_v26, -inf }
 0x2ca   : > { %704 = vmax.xlane.f32.xlu1 %v703_v57 }
 0x31d   : > { %v696_v27 = vpop.xlane.xlu1 %695 }
 0x31e   : > { %v710_v33 = vsub.f32 %v1808_v35, %v696_v27  ;;  %v693_v28 = vpop.xlane.xlu0 %692 }
 0x31f   : > { %v709_v29 = vsub.f32 %v1814_v18, %v693_v28 }
 0x320   : > { %v717_v31 = vmul.f32 1.442695, %v710_v33 }
 0x321   : > { %v715_v23 = vmul.f32 1.442695, %v709_v29 }
 0x322   : > { %1322 = vpow2.f32 %v717_v31 }
 0x323   : > { %1324 = vpow2.f32 %v715_v23 }
 0x32c   : > { %v1323_v34 = vpop.eup %1322 }
 0x32d   : > { %v1325_v36 = vpop.eup %1324  ;;  %v730_v7 = vsel %vm371_vm1, %v1323_v34, 0.0 }
 0x32e   : > { %731 = vadd.xlane.f32.xlu0 %v730_v7  ;;  %v727_v52 = vsel %vm371_vm1, %v1325_v36, 0.0 }
 0x32f   : > { %728 = vadd.xlane.f32.xlu1 %v727_v52 }
 0x33f   : > { %v699_v41 = vpop.xlane.xlu0 %698 }
 0x340   : > { %v711_v42 = vsub.f32 %v687_v1, %v699_v41  ;;  %v831_v1 = vld [vmem:[%s1676_s14 + $0x10] sm:$0xff] }
 0x341   : > { %v1214_v3 = vpack.c.bf16 %v832_v2, %v831_v1 }
 0x342   : > { %v719_v43 = vmul.f32 1.442695, %v711_v42 }
 0x343   : > { %v702_v46 = vpop.xlane.xlu0 %701  ;;  %1215 = vmatprep.subr.bf16.mxu1 %v1214_v3 }
 0x344   : > { %1326 = vpow2.f32 %v719_v43  ;;  %v712_v35 = vsub.f32 %v688_v10, %v702_v46  ;;  %1217 = vmatpush3.bf16.msra.mxu1 %v1214_v3 }
 0x346   : > { %v721_v47 = vmul.f32 1.442695, %v712_v35 }
 0x347   : > { %v708_v18 = vpop.xlane.xlu0 %707 }
 0x348   : > { %1328 = vpow2.f32 %v721_v47  ;;  %v714_v49 = vsub.f32 %v690_v32, %v708_v18 }
 0x34a   : > { %v725_v50 = vmul.f32 1.442695, %v714_v49 }
 0x34c   : > { %1330 = vpow2.f32 %v725_v50 }
 0x34e   : > { %v1861_v51 = vpop.eup %1326 }
 0x34f   : > { %v733_v25 = vsel %vm371_vm1, %v1861_v51, 0.0 }
 0x350   : > { %734 = vadd.xlane.f32.xlu1 %v733_v25 }
 0x352   : > { %v1865_v54 = vpop.eup %1328 }
 0x353   : > { %v736_v56 = vsel %vm371_vm1, %v1865_v54, 0.0 }
 0x354   : > { %737 = vadd.xlane.f32.xlu0 %v736_v56 }
 0x356   : > { %v1869_v58 = vpop.eup %1330 }
 0x357   : > { %v742_v60 = vsel %vm371_vm1, %v1869_v58, 0.0  ;;  %v705_v4 = vpop.xlane.xlu1 %704 }
 0x358   : > { %743 = vadd.xlane.f32.xlu0 %v742_v60  ;;  %v713_v5 = vsub.f32 %v689_v26, %v705_v4 }
 0x35a   : > { %v723_v6 = vmul.f32 1.442695, %v713_v5 }
 0x35c   : > { %1332 = vpow2.f32 %v723_v6 }
 0x361   : > { %805 = vrot.lane.b32.xlu1 %v1725_v40, %s1496_s18 }
 0x366   : > { %v1880_v8 = vpop.eup %1332 }
 0x367   : > { %v739_v10 = vsel %vm371_vm1, %v1880_v8, 0.0 }
 0x36e   : > { %807 = vrot.lane.b32.xlu0 %v1722_v39, %s1496_s18 }
 0x372   : > { %813 = vrot.lane.b32.xlu0 %v1751_v55, %s1496_s18 }
 0x385   : > { %740 = vadd.xlane.f32.xlu1 %v739_v10 }
 0x396   : > { %809 = vrot.lane.b32.xlu1 %v1739_v48, %s1496_s18 }
 0x39a   : > { %811 = vrot.lane.b32.xlu1 %v1733_v45, %s1496_s18 }
 0x39e   : > { %815 = vrot.lane.b32.xlu1 %v1747_v53, %s1496_s18 }
 0x3bb   : > { %v732_v11 = vpop.xlane.xlu0 %731 }
 0x3bc   : > { %1334 = vrcp.f32 %v732_v11  ;;  %v729_v37 = vpop.xlane.xlu1 %728 }
 0x3bd   : > { %1336 = vrcp.f32 %v729_v37 }
 0x3c6   : > { %v1335_v14 = vpop.eup %1334 }
 0x3c7   : > { %v1337_v15 = vpop.eup %1336  ;;  %v748_v30 = vmul.f32 %v1335_v14, %v1323_v34 }
 0x3c8   : > { %v746_v32 = vmul.f32 %v1337_v15, %v1325_v36 }
 0x3c9   : > { %v758_v19 = vmul.f32 %v748_v30, %v1798_v12 }
 0x3ca   : > { %v757_v16 = vmul.f32 %v746_v32, %v1800_v13 }
 0x3cb   : > { %v770_v21 = vsel %vm371_vm1, %v758_v19, 0.0 }
 0x3cc   : > { %v763_v17 = vsel %vm371_vm1, %v757_v16, 0.0  ;;  %v771_v24 = vrot.slane %v770_v21, 4 }
 0x3cd   : > { %v764_v44 = vrot.slane %v763_v17, 4 }
 0x3ce   : > { %v772_v57 = vadd.f32 %v771_v24, %v770_v21 }
 0x3cf   : > { %v765_v20 = vadd.f32 %v764_v44, %v763_v17 }
 0x3d0   : > { %v773_v33 = vrot.slane %v772_v57, 2 }
 0x3d1   : > { %v766_v22 = vrot.slane %v765_v20, 2 }
 0x3d2   : > { %v774_v31 = vadd.f32 %v773_v33, %v772_v57 }
 0x3d3   : > { %v767_v26 = vadd.f32 %v766_v22, %v765_v20 }
 0x3d4   : > { %v775_v36 = vrot.slane %v774_v31, 1 }
 0x3d5   : > { %v768_v27 = vrot.slane %v767_v26, 1 }
 0x3d6   : > { %v776_v12 = vadd.f32 %v775_v36, %v774_v31 }
 0x3d7   : > { %v769_v29 = vadd.f32 %v768_v27, %v767_v26 }
 0x3dd   : > { %v735_v28 = vpop.xlane.xlu1 %734 }
 0x3de   : > { %1338 = vrcp.f32 %v735_v28 }
 0x3e1   : > { %v738_v23 = vpop.xlane.xlu0 %737  ;;  %v806_v34 = vpop.permute.xlu1 %805 }
 0x3e2   : > { %v823_v13 = vmul.f32 %v806_v34, %v769_v29  ;;  %1340 = vrcp.f32 %v738_v23 }
 0x3e4   : > { %1193 = vmatprep.mubr.msk.f32.mxu1 %vm371_vm1, %v823_v13 }
 0x3e5   : > { %v744_v7 = vpop.xlane.xlu0 %743 }
 0x3e6   : > { %1342 = vrcp.f32 %v744_v7 }
 0x3e8   : > { %v1339_v42 = vpop.eup %1338 }
 0x3e9   : > { %v808_v52 = vpop.permute.xlu0 %807  ;;  %v750_v43 = vmul.f32 %v1339_v42, %v1861_v51 }
 0x3ea   : > { %v824_v41 = vmul.f32 %v808_v52, %v776_v12 }
 0x3eb   : > { %v759_v35 = vmul.f32 %v750_v43, %v1826_v59 }
 0x3ec   : > { %1194 = vmatmul.mubr.msk.f32.vlgmr.msra.gmra.mrb[0].mxu1 %vm371_vm1, %v824_v41  ;;  %v1341_v46 = vpop.eup %1340 }
 0x3ed   : > { %v752_v47 = vmul.f32 %v1341_v46, %v1865_v54  ;;  %v777_v18 = vsel %vm371_vm1, %v759_v35, 0.0  ;;  %v814_v28 = vpop.permute.xlu0 %813 }
 0x3ee   : > { %v778_v50 = vrot.slane %v777_v18, 4 }
 0x3ef   : > { %v760_v49 = vmul.f32 %v752_v47, %v1830_v0 }
 0x3f0   : > { %v779_v56 = vadd.f32 %v778_v50, %v777_v18  ;;  %v1343_v63 = vpop.eup %1342 }
 0x3f1   : > { %v784_v25 = vsel %vm371_vm1, %v760_v49, 0.0  ;;  %v756_v2 = vmul.f32 %v1343_v63, %v1869_v58 }
 0x3f2   : > { %v785_v60 = vrot.slane %v784_v25, 4  ;;  %v780_v61 = vrot.slane %v779_v56, 2 }
 0x3f3   : > { %v762_v4 = vmul.f32 %v756_v2, %v1838_v9 }
 0x3f4   : > { %v786_v62 = vadd.f32 %v785_v60, %v784_v25  ;;  %v781_v1 = vadd.f32 %v780_v61, %v779_v56 }
 0x3f5   : > { %v798_v11 = vsel %vm371_vm1, %v762_v4, 0.0 }
 0x3f6   : > { %v787_v51 = vrot.slane %v786_v62, 2  ;;  %v782_v59 = vrot.slane %v781_v1, 1  ;;  %v799_v15 = vrot.slane %v798_v11, 4 }
 0x3f8   : > { %v788_v3 = vadd.f32 %v787_v51, %v786_v62  ;;  %v783_v0 = vadd.f32 %v782_v59, %v781_v1  ;;  %v800_v16 = vadd.f32 %v799_v15, %v798_v11 }
 0x3fa   : > { %v789_v5 = vrot.slane %v788_v3, 1  ;;  %v801_v17 = vrot.slane %v800_v16, 2 }
 0x3fc   : > { %v790_v37 = vadd.f32 %v789_v5, %v788_v3  ;;  %v802_v21 = vadd.f32 %v801_v17, %v800_v16 }
 0x3fe   : > { %v803_v26 = vrot.slane %v802_v21, 1 }
 0x400   : > { %v804_v29 = vadd.f32 %v803_v26, %v802_v21 }
 0x412   : > { %v741_v54 = vpop.xlane.xlu1 %740 }
 0x413   : > { %1344 = vrcp.f32 %v741_v54 }
 0x416   : > { %v810_v6 = vpop.permute.xlu1 %809 }
 0x417   : > { %v825_v10 = vmul.f32 %v810_v6, %v783_v0 }
 0x419   : > { %1196 = vmatprep.mubr.msk.f32.mxu1 %vm371_vm1, %v825_v10 }
 0x41a   : > { %v812_v14 = vpop.permute.xlu1 %811 }
 0x41b   : > { %v826_v32 = vmul.f32 %v812_v14, %v790_v37 }
 0x41d   : > { %v1345_v30 = vpop.eup %1344  ;;  %1197 = vmatmul.mubr.msk.f32.gmra.mrb[2].mxu1 %vm371_vm1, %v826_v32 }
 0x41e   : > { %v754_v58 = vmul.f32 %v1345_v30, %v1880_v8  ;;  %v816_v27 = vpop.permute.xlu1 %815 }
 0x41f   : > { %v828_v23 = vmul.f32 %v816_v27, %v804_v29 }
 0x420   : > { %v761_v9 = vmul.f32 %v754_v58, %v1850_v38 }
 0x422   : > { %v791_v44 = vsel %vm371_vm1, %v761_v9, 0.0 }
 0x423   : > { %v792_v19 = vrot.slane %v791_v44, 4 }
 0x425   : > { %v793_v20 = vadd.f32 %v792_v19, %v791_v44 }
 0x427   : > { %v794_v22 = vrot.slane %v793_v20, 2 }
 0x429   : > { %v795_v24 = vadd.f32 %v794_v22, %v793_v20 }
 0x42b   : > { %v796_v57 = vrot.slane %v795_v24, 1 }
 0x42d   : > { %v797_v33 = vadd.f32 %v796_v57, %v795_v24 }
 0x42f   : > { %v827_v31 = vmul.f32 %v814_v28, %v797_v33 }
 0x431   : > { %1199 = vmatprep.mubr.msk.f32.mxu1 %vm371_vm1, %v827_v31 }
 0x432   : > { %1200 = vmatmul.mubr.msk.f32.gmra.mrb[4].mxu1 %vm371_vm1, %v828_v23 }
 0x4bf   : > { %v1195_v38 = vpop.f32.mrb[0].mxu1 }
 0x4c0   : > { %v947_v8 = vadd.f32 %v1195_v38, %v1722_v39  ;;  %v917_v34 = vpop.f32.mrb[1].mxu1 }
 0x4c1   : > { %v946_v13 = vadd.f32 %v917_v34, %v1725_v40 }
 0x4c2   : > { %957 = vst.msk [vmem:[#allocation2 + $0x8] sm:$0xff] (!%p1140_p4), %vm371_vm1, %v947_v8 }
 0x4c3   : > { %956 = vst.msk [vmem:[#allocation2] sm:$0xff] (!%p1140_p4), %vm371_vm1, %v946_v13 }
 0x4f0   : > { %v1198_v36 = vpop.f32.mrb[2].mxu1 }
 0x4f1   : > { %v949_v7 = vadd.f32 %v1198_v36, %v1733_v45  ;;  %v927_v12 = vpop.f32.mrb[3].mxu1 }
 0x4f2   : > { %v948_v52 = vadd.f32 %v927_v12, %v1739_v48 }
 0x4f3   : > { %959 = vst.msk [vmem:[#allocation2 + $0x18] sm:$0xff] (!%p1140_p4), %vm371_vm1, %v949_v7 }
 0x4f4   : > { %958 = vst.msk [vmem:[#allocation2 + $0x10] sm:$0xff] (!%p1140_p4), %vm371_vm1, %v948_v52 }
 0x501   : > { %955 = sbr.rel (%p1140_p4) target bundleno = 1290 (0x50a), region = 56 }
 0x505   : > { %v1201_v41 = vpop.f32.mrb[4].mxu1 }
 0x506   : > { %v951_v42 = vadd.f32 %v1201_v41, %v1747_v53  ;;  %v937_v43 = vpop.f32.mrb[5].mxu1 }
 0x507   : > { %v950_v46 = vadd.f32 %v937_v43, %v1751_v55 }
 0x508   : > { %961 = vst.msk [vmem:[#allocation2 + $0x28] sm:$0xff] %vm371_vm1, %v951_v42 }
 0x509   : > { %960 = vst.msk [vmem:[#allocation2 + $0x20] sm:$0xff] %vm371_vm1, %v950_v46 }
 0x50a PF: > { %p1141_p5 = scmp.ne.s32.totalorder %s1480_s21, 1 }
 0x50b   : > { %v972_v39 = vrot.slane (!%p1141_p5), %v947_v8, 7  ;;  %vm973_vm14 = vcmask (!%p1141_p5), 1041409   ;;  %v975_v40 = vrot.slane (!%p1141_p5), %v948_v52, 6  ;;  %vm976_vm15 = vcmask (!%p1141_p5), 1042434  }
 0x50c   : > { %965 = sbr.rel (%p1141_p5) target bundleno = 1299 (0x513), region = 60  ;;  %v978_v45 = vrot.slane (!%p1141_p5), %v949_v7, 5  ;;  %vm979_vm0 = vcmask (!%p1141_p5), 1043459   ;;  %v981_v48 = vrot.slane (!%p1141_p5), %v950_v46, 4  ;;  %vm982_vm2 = vcmask (!%p1141_p5), 1044484  }
 0x50d   : > { %v974_v53 = vsel (!%p1141_p5), %vm973_vm14, %v972_v39, %v946_v13  ;;  %v984_v55 = vrot.slane (!%p1141_p5), %v951_v42, 3  ;;  %vm985_vm3 = vcmask (!%p1141_p5), 1045509   ;;  %vm988_vm4 = vcmask (!%p1141_p5), 259072  }
 0x50e   : > { %v977_v35 = vsel (!%p1141_p5), %vm976_vm15, %v975_v40, %v974_v53 }
 0x50f   : > { %v980_v47 = vsel (!%p1141_p5), %vm979_vm0, %v978_v45, %v977_v35 }
 0x510   : > { %v983_v18 = vsel (!%p1141_p5), %vm982_vm2, %v981_v48, %v980_v47 }
 0x511   : > { %v986_v49 = vsel (!%p1141_p5), %vm985_vm3, %v984_v55, %v983_v18 }
 0x512   : > { %989 = vst.msk [vmem:[#allocation8] sm:$0x3f] (!%p1141_p5), %vm988_vm4, %v986_v49 }
 0x513 PF: > { %p1925_p8 = scmp.eq.s32.totalorder %s1113_s24, 1  ;;  %s1497_s14 = smov [#allocation8]  }
 0x514   : > { %s999_s12 = sshll.u32 %s1497_s14, 4  ;;  %s1000_s12 = int_to_ptr.vmem [resolvable:$true] %s999_s12 }
 0x515   : > { %s1404_s8 = scalar_lea.vmem %s1000_s12, 128  ;;  %p1411_p13 = scmp.lt.s32.totalorder %s1000_s12, %s1000_s12 }
 0x516   : > { %p1405_p9 = scmp.ne.s32.totalorder %s1000_s12, %s1404_s8  ;;  %p1412_p2 = scmp.lt.s32.totalorder %s1404_s8, %s1404_s8 }
 0x518   : > { %p1406_p10 = pnand %p1405_p9, %p1925_p8  ;;  %p1413_p3 = por %p1412_p2, %p1411_p13 }
 0x51a   : > { %p1407_p11 = pneg %p1406_p10 }
 0x51c   : > { %p1414_p12 = pnand %p1413_p3, %p1407_p11 }
 0x51e   : > { %1417 = shalt.err (!%p1414_p12)
}
 0x51f   : > { %s1418_s24 = scalar_lea.hbm %s1974_s5, 128 }
 0x520   : > { %p1419_p0 = scmp.ne.s32.totalorder %s1974_s5, %s1418_s24  ;;  %p1424_p1 = scmp.lt.u32.totalorder %s1418_s24, %s1974_s5 }
 0x522   : > { %p1420_p6 = pnand %p1419_p0, %p1925_p8 }
 0x524   : > { %p1421_p7 = pneg %p1420_p6 }
 0x526   : > { %p1426_p4 = pnand %p1424_p1, %p1421_p7 }
 0x528   : > { %1429 = shalt.err (!%p1426_p4)
}
 0x529   : > { %1225 = dma.vmem_to_hbm [thread:$0]  (%p1925_p8), %s1000_s12, 128, %s1974_s5, [#allocation5]  }
 0x52a   : > { %1463 = dma.done.wait (%p1925_p8), [#allocation5], 128  }
 0x52b   : > { %1465 = vsyncadd (%p1925_p8), [#allocation5], 4294967168 }
 0x52c PF: > { %s20_s23 = sadd.s32 1, %s1488_s23   ;;  %s1988_s18 = smov %s1472_s19 }
 0x52d   : > { %p17_p5 = scmp.ge.s32.totalorder %s20_s23, 4   ;;  %s1989_s19 = smov %s1476_s20 }
 0x52e   : > { %s1990_s20 = smov %s1616_s10  ;;  %s1991_s21 = smov %s1484_s22 }
 0x52f   : > { %s1992_s22 = smov %s1994_s6  ;;  %19 = sbr.rel (!%p17_p5) target bundleno = 6 (0x6), region = 105 }
 0x536   :  { %1012 = vsyncpa [#allocation4], 1 }
 0x537   :  { %1014 = vsyncpa [#allocation4 + $0x1], 1 }
 0x538   :  { %1015 = vsyncpa [#allocation7], 1 }
 0x539   :  { %1017 = vsyncpa [#allocation7 + $0x1], 1 }
 0x53a   :  { %1018 = vsyncpa [#allocation5], 1 }
 0x53b   :  { %1020 = vsyncpa [#allocation5 + $0x1], 1 }

</bundles_post_ra>
